<compile_context>
chip_gen: v5e
topology: v5e:2x2
jax: 0.10.0
libtpu: 0.0.40
codegen_flags: <defaults>
</compile_context>

<pallas_src>
import functools

import jax
import jax.numpy as jnp
from jax.experimental import pallas as pl
from jax.experimental.pallas import tpu as pltpu

_LANES = 128
_SUBLANES = 8


def _label_smoothing_kernel(pred_ref, tgt_ref, out_ref, *, smoothing, n_cls,
                            apply_log_softmax, n_total, tile_n,
                            steps_per_split, needs_mask):
    split = pl.program_id(0)      # "parallel" axis (megacore split on v7x)
    step = pl.program_id(1)       # "arbitrary" reduction axis

    @pl.when(step == 0)
    def _init():
        out_ref[...] = jnp.zeros_like(out_ref)

    x = pred_ref[...].astype(jnp.float32)            # (tile_n, C)
    tn, c = x.shape
    tgt = tgt_ref[...]                               # (tile_n, 1) int32

    # One-hot of the target class (the PyTorch scatter_), used only as a
    # per-class weight — true_dist is never materialized in HBM.
    class_ids = jax.lax.broadcasted_iota(jnp.int32, (tn, c), 1)
    is_tgt = (class_ids == tgt).astype(jnp.float32)  # (tile_n, C)

    off = jnp.float32(smoothing / (n_cls - 1))
    on_minus_off = jnp.float32((1.0 - smoothing) - smoothing / (n_cls - 1))
    # Smoothed-distribution weights; fused so only ONE (tile_n, C) lane
    # reduction is needed per tile (XLU relief).
    w = off + on_minus_off * is_tgt                  # (tile_n, C)

    if apply_log_softmax:
        m = jnp.max(x, axis=-1, keepdims=True)       # (tn, 1)
        z = x - m
        lse = jnp.log(jnp.sum(jnp.exp(z), axis=-1, keepdims=True))
        core = jnp.sum(w * z, axis=-1, keepdims=True)
        # sum_c w_c * logp_c = sum_c w_c * z_c - (sum_c w_c) * lse
        per_row = -(core - (off * n_cls + on_minus_off) * lse)
    else:                                            # nllloss=True: x is log-probs
        per_row = -jnp.sum(w * x, axis=-1, keepdims=True)

    if needs_mask:
        # Mask padded rows of the last tile AND ghost tiles created by the
        # 2-way split, using the UNCLAMPED global block index.  Row-local
        # NaN/Inf in padded rows is discarded by the where.
        gb = split * steps_per_split + step
        row_ids = gb * tile_n + jax.lax.broadcasted_iota(jnp.int32, (tn, 1), 0)
        per_row = jnp.where(row_ids < n_total, per_row, 0.0)

    # Output block index depends only on `split`, so it stays VMEM-resident
    # across the "arbitrary" axis; the scalar partial sum is splat across the
    # whole (1, 8, 128) block.
    out_ref[...] += jnp.sum(per_row)


def _round_down(x, m):
    return (x // m) * m


def _pick_tile_n(n, c, dtype):
    """Rows per block, budgeted against the *padded* double-buffered VMEM footprint."""
    itemsize = jnp.dtype(dtype).itemsize
    min_sub = {4: 8, 2: 16, 1: 32}.get(itemsize, 8)       # sublane packing per dtype
    pred_row_bytes = int(pl.cdiv(c, _LANES)) * _LANES * itemsize   # C lane-padded to 128
    tgt_row_bytes = _LANES * 4                                     # (tile_n,1) i32 pads to 128 lanes
    bytes_per_row = 2 * (pred_row_bytes + tgt_row_bytes)           # x2 pipeline buffers
    # ~12 MiB total keeps both double-buffered inputs inside v5e's 16 MiB
    # default scoped-VMEM (v6e/v7x default to 32 MiB, so safe everywhere).
    budget_rows = max(min_sub, (12 * 1024 * 1024) // bytes_per_row)
    budget_rows = _round_down(budget_rows, min_sub)
    if n <= budget_rows:
        return n                                           # full-array block is layout-legal
    return budget_rows


def label_smoothing_loss(pred, target, *, classes, smoothing=0.0,
                         nllloss=False, tile_n=None):
    """pred: (N, C) float logits (or log-probs if nllloss=True); target: (N,) int."""
    n, c = pred.shape
    assert c == classes
    assert classes > 1, "smoothing/(classes-1) is undefined for classes == 1"
    # TODO(synk): out-of-range targets (e.g. ignore_index) are not masked; the
    # original module's scatter_ would error on them, so they are unsupported.

    if tile_n is None:
        tile_n = _pick_tile_n(n, c, pred.dtype)
    tile_n = int(min(tile_n, n))

    n_blocks = int(pl.cdiv(n, tile_n))
    # 2-way split: feeds both TCs on v7x; on 1-TC v5e/v6e it is just a serial
    # outer loop of size 2 with negligible overhead.
    n_splits = 2 if n_blocks >= 2 else 1
    steps_per_split = int(pl.cdiv(n_blocks, n_splits))
    needs_mask = (n_splits * steps_per_split * tile_n) != n

    tgt2d = target.astype(jnp.int32).reshape(n, 1)

    kernel = functools.partial(
        _label_smoothing_kernel,
        smoothing=float(smoothing),
        n_cls=int(classes),
        apply_log_softmax=not nllloss,
        n_total=int(n),
        tile_n=int(tile_n),
        steps_per_split=int(steps_per_split),
        needs_mask=bool(needs_mask),
    )

    last_block = n_blocks - 1

    def in_map(p, i):
        b = p * steps_per_split + i
        return (jnp.minimum(b, last_block), 0)     # clamp ghost blocks of the split

    itemsize = jnp.dtype(pred.dtype).itemsize
    cost = pl.CostEstimate(
        flops=8 * n * c,
        transcendentals=(n * c + n) if not nllloss else 0,
        bytes_accessed=n * c * itemsize + n * 4 + n_splits * _SUBLANES * _LANES * 4,
    )

    out = pl.pallas_call(
        kernel,
        out_shape=jax.ShapeDtypeStruct((n_splits, _SUBLANES, _LANES), jnp.float32),
        grid=(n_splits, steps_per_split),
        in_specs=[
            pl.BlockSpec((tile_n, c), in_map),
            pl.BlockSpec((tile_n, 1), in_map),
        ],
        out_specs=pl.BlockSpec((1, _SUBLANES, _LANES), lambda p, i: (p, 0, 0)),
        compiler_params=pltpu.CompilerParams(
            dimension_semantics=("parallel", "arbitrary")),
        cost_estimate=cost,
    )(pred, tgt2d)

    # Each split's partial sum is splat across its (8,128) block; take one
    # element per split, combine, and apply the global mean.
    return jnp.sum(out[:, 0, 0]) * jnp.float32(1.0 / n)


def _reference(pred, target, *, classes, smoothing=0.0, nllloss=False):
    pred = pred.astype(jnp.float32)
    if not nllloss:
        pred = jax.nn.log_softmax(pred, axis=-1)
    true_dist = jnp.full_like(pred, smoothing / (classes - 1))
    onehot = jax.nn.one_hot(target, classes, dtype=pred.dtype)
    true_dist = jnp.where(onehot > 0, 1.0 - smoothing, true_dist)
    return jnp.mean(jnp.sum(-true_dist * pred, axis=-1))


if __name__ == "__main__":
    N, C = 32, 10  # MNIST-like: 10 classes
    key = jax.random.PRNGKey(0)
    kp, kt = jax.random.split(key)
    pred = jax.random.normal(kp, (N, C), dtype=jnp.float32)
    target = jax.random.randint(kt, (N,), 0, C, dtype=jnp.int32)
    smoothing = 0.1

    # Tiled path: 4 blocks -> grid (2, 2), per-split accumulate, wrapper mean.
    loss = jax.block_until_ready(
        label_smoothing_loss(pred, target, classes=C, smoothing=smoothing,
                             tile_n=8))
    ref = _reference(pred, target, classes=C, smoothing=smoothing)
    assert jnp.allclose(loss, ref, atol=1e-5, rtol=1e-5), (loss, ref)

    # Default tile selection: single full-array block, grid (1, 1).
    loss_def = jax.block_until_ready(
        label_smoothing_loss(pred, target, classes=C, smoothing=smoothing))
    assert jnp.allclose(loss_def, ref, atol=1e-5, rtol=1e-5), (loss_def, ref)

    # nllloss=True path (pred already log-probs).
    logp = jax.nn.log_softmax(pred, axis=-1)
    loss_nll = jax.block_until_ready(
        label_smoothing_loss(logp, target, classes=C, smoothing=smoothing,
                             nllloss=True, tile_n=8))
    ref_nll = _reference(logp, target, classes=C, smoothing=smoothing,
                         nllloss=True)
    assert jnp.allclose(loss_nll, ref_nll, atol=1e-5, rtol=1e-5), (loss_nll, ref_nll)

    # bf16 logits: half the HBM traffic, upcast to f32 inside the kernel.
    pred_bf16 = pred.astype(jnp.bfloat16)
    loss_bf16 = jax.block_until_ready(
        label_smoothing_loss(pred_bf16, target, classes=C, smoothing=smoothing,
                             tile_n=16))
    ref_bf16 = _reference(pred_bf16.astype(jnp.float32), target, classes=C,
                          smoothing=smoothing)
    assert jnp.allclose(loss_bf16, ref_bf16, atol=1e-5, rtol=1e-5), (loss_bf16, ref_bf16)

    # Uneven batch exercises partial-tile masking + ghost-block clamping.
    loss_uneven = jax.block_until_ready(
        label_smoothing_loss(pred[:28], target[:28], classes=C,
                             smoothing=smoothing, tile_n=8))
    ref_uneven = _reference(pred[:28], target[:28], classes=C,
                            smoothing=smoothing)
    assert jnp.allclose(loss_uneven, ref_uneven, atol=1e-5, rtol=1e-5), (
        loss_uneven, ref_uneven)

    print("KERNEL_OK")
</pallas_src>

<mosaic_0001>
module attributes {stable_mosaic.version = 11 : i64} {
  func.func @_label_smoothing_kernel(%arg0: i32, %arg1: i32, %arg2: memref<8x10xf32, #tpu.memory_space<vmem>>, %arg3: memref<8x1xi32, #tpu.memory_space<vmem>>, %arg4: memref<1x8x128xf32, #tpu.memory_space<vmem>>) attributes {dimension_semantics = [#tpu.dimension_semantics<parallel>, #tpu.dimension_semantics<arbitrary>], iteration_bounds = array<i64: 2, 2>, scalar_prefetch = 0 : i64, scratch_operands = 0 : i64, tpu.core_type = #tpu.core_type<tc>, window_params = [{transform_indices = @transform_0, window_bounds = array<i64: 8, 10>}, {transform_indices = @transform_1, window_bounds = array<i64: 8, 1>}, {transform_indices = @transform_2, window_bounds = array<i64: 1, 8, 128>}]} {
    %c0_i32 = arith.constant 0 : i32
    %0 = arith.cmpi eq, %arg1, %c0_i32 : i32
    %1 = arith.extui %0 : i1 to i32
    %c0_i32_0 = arith.constant 0 : i32
    %2 = arith.cmpi ne, %1, %c0_i32_0 : i32
    scf.if %2 {
      %cst_19 = arith.constant 0.000000e+00 : f32
      %40 = vector.broadcast %cst_19 : f32 to vector<1x8x128xf32>
      %c0_20 = arith.constant 0 : index
      %c0_21 = arith.constant 0 : index
      %c0_22 = arith.constant 0 : index
      %41 = vector.load %arg4[%c0_20, %c0_21, %c0_22] : memref<1x8x128xf32, #tpu.memory_space<vmem>>, vector<1x8x128xf32>
      tpu.vector_store %arg4[%c0_20, %c0_21, %c0_22], %40 {strides = array<i32>} : memref<1x8x128xf32, #tpu.memory_space<vmem>>, vector<1x8x128xf32>,
    } else {
    }
    %c0 = arith.constant 0 : index
    %c0_1 = arith.constant 0 : index
    %3 = vector.load %arg2[%c0, %c0_1] : memref<8x10xf32, #tpu.memory_space<vmem>>, vector<8x10xf32>
    %c0_2 = arith.constant 0 : index
    %c0_3 = arith.constant 0 : index
    %4 = vector.load %arg3[%c0_2, %c0_3] : memref<8x1xi32, #tpu.memory_space<vmem>>, vector<8x1xi32>
    %5 = tpu.iota {dimensions = array<i32: 1>} : vector<8x10xi32>
    %6 = vector.broadcast %4 : vector<8x1xi32> to vector<8x10xi32>
    %7 = arith.cmpi eq, %5, %6 : vector<8x10xi32>
    %8 = arith.extui %7 : vector<8x10xi1> to vector<8x10xi32>
    %9 = arith.sitofp %8 : vector<8x10xi32> to vector<8x10xf32>
    %cst = arith.constant 0.888888895 : f32
    %10 = vector.broadcast %cst : f32 to vector<8x10xf32>
    %11 = arith.mulf %10, %9 : vector<8x10xf32>
    %cst_4 = arith.constant 0.0111111114 : f32
    %12 = vector.broadcast %cst_4 : f32 to vector<8x10xf32>
    %13 = arith.addf %12, %11 : vector<8x10xf32>
    %cst_5 = arith.constant dense<0xFF800000> : vector<8xf32>
    %14 = vector.multi_reduction <maximumf>, %3, %cst_5 [1] : vector<8x10xf32> to vector<8xf32>
    %15 = vector.shape_cast %14 : vector<8xf32> to vector<8x1xf32>
    %16 = vector.broadcast %15 : vector<8x1xf32> to vector<8x10xf32>
    %17 = arith.subf %3, %16 : vector<8x10xf32>
    %18 = math.exp %17 : vector<8x10xf32>
    %cst_6 = arith.constant dense<0.000000e+00> : vector<8xf32>
    %19 = vector.multi_reduction <add>, %18, %cst_6 [1] : vector<8x10xf32> to vector<8xf32>
    %20 = vector.shape_cast %19 : vector<8xf32> to vector<8x1xf32>
    %21 = math.log %20 : vector<8x1xf32>
    %22 = arith.mulf %13, %17 : vector<8x10xf32>
    %cst_7 = arith.constant dense<0.000000e+00> : vector<8xf32>
    %23 = vector.multi_reduction <add>, %22, %cst_7 [1] : vector<8x10xf32> to vector<8xf32>
    %24 = vector.shape_cast %23 : vector<8xf32> to vector<8x1xf32>
    %cst_8 = arith.constant 0.0111111114 : f32
    %cst_9 = arith.constant 1.000000e+01 : f32
    %25 = arith.mulf %cst_8, %cst_9 : f32
    %cst_10 = arith.constant 0.888888895 : f32
    %26 = arith.addf %25, %cst_10 : f32
    %27 = vector.broadcast %26 : f32 to vector<8x1xf32>
    %28 = arith.mulf %27, %21 : vector<8x1xf32>
    %29 = arith.subf %24, %28 : vector<8x1xf32>
    %cst_11 = arith.constant 0.000000e+00 : f32
    %30 = vector.broadcast %cst_11 : f32 to vector<8x1xf32>
    %31 = arith.subf %30, %29 : vector<8x1xf32>
    %c0_12 = arith.constant 0 : index
    %c0_13 = arith.constant 0 : index
    %c0_14 = arith.constant 0 : index
    %32 = vector.load %arg4[%c0_12, %c0_13, %c0_14] : memref<1x8x128xf32, #tpu.memory_space<vmem>>, vector<1x8x128xf32>
    %33 = vector.shape_cast %31 : vector<8x1xf32> to vector<1x8x1xf32>
    %cst_15 = arith.constant dense<0.000000e+00> : vector<1xf32>
    %34 = vector.multi_reduction <add>, %33, %cst_15 [1, 2] : vector<1x8x1xf32> to vector<1xf32>
    %35 = vector.shape_cast %34 : vector<1xf32> to vector<1x1x1xf32>
    %36 = vector.extract %35[0, 0, 0] : f32 from vector<1x1x1xf32>
    %37 = vector.broadcast %36 : f32 to vector<1x8x128xf32>
    %38 = arith.addf %32, %37 : vector<1x8x128xf32>
    %c0_16 = arith.constant 0 : index
    %c0_17 = arith.constant 0 : index
    %c0_18 = arith.constant 0 : index
    %39 = vector.load %arg4[%c0_16, %c0_17, %c0_18] : memref<1x8x128xf32, #tpu.memory_space<vmem>>, vector<1x8x128xf32>
    tpu.vector_store %arg4[%c0_16, %c0_17, %c0_18], %38 {strides = array<i32>} : memref<1x8x128xf32, #tpu.memory_space<vmem>>, vector<1x8x128xf32>,
    return
  }
  func.func @transform_0(%arg0: i32, %arg1: i32) -> (i32, i32) {
    %c2_i32 = arith.constant 2 : i32
    %0 = arith.muli %arg0, %c2_i32 : i32
    %1 = arith.addi %0, %arg1 : i32
    %c3_i32 = arith.constant 3 : i32
    %2 = arith.minsi %1, %c3_i32 : i32
    %c0_i32 = arith.constant 0 : i32
    %c0_i32_0 = arith.constant 0 : i32
    return %2, %c0_i32 : i32, i32
  }
  func.func @transform_1(%arg0: i32, %arg1: i32) -> (i32, i32) {
    %c2_i32 = arith.constant 2 : i32
    %0 = arith.muli %arg0, %c2_i32 : i32
    %1 = arith.addi %0, %arg1 : i32
    %c3_i32 = arith.constant 3 : i32
    %2 = arith.minsi %1, %c3_i32 : i32
    %c0_i32 = arith.constant 0 : i32
    %c0_i32_0 = arith.constant 0 : i32
    return %2, %c0_i32 : i32, i32
  }
  func.func @transform_2(%arg0: i32, %arg1: i32) -> (i32, i32, i32) {
    %c0_i32 = arith.constant 0 : i32
    %c0_i32_0 = arith.constant 0 : i32
    %c0_i32_1 = arith.constant 0 : i32
    return %arg0, %c0_i32, %c0_i32_0 : i32, i32, i32
  }
}

</mosaic_0001>

<bundles_post_ra>
// kernel: tpu_custom_call.1
= control target key start
LH: loop header
LB: loop body
LE: loop exit
PB: predicated region body
PF: predicated region fallthrough
CT: control target
= control target key end

     0   :  { %7 = vsyncpa [#allocation3], 0  ;;  %s727_s0 = inlined_call_operand.vmem [shape: f32[32,10], index: 0, kind: input, shape index: {}]   ;;  %s728_s1 = inlined_call_operand.vmem [shape: s32[32,1], index: 1, kind: input, shape index: {}]   ;;  %s729_s2 = inlined_call_operand.hbm [shape: f32[2,8,128], index: 2, kind: output, shape index: {}]  }
   0x1   :  { %9 = vsyncpa [#allocation3 + $0x1], 0  ;;  %s593_s9 = smov 0   ;;  %s595_s10 = smov 0  }
   0x2   :  { %s597_s11 = smov 0   ;;  %s599_s12 = smov 0  }
   0x3   :  { %s601_s13 = smov 0   ;;  %s603_s14 = smov 0  }
   0x4   :  { %s605_s15 = smov 0   ;;  %s607_s16 = smov 0  }
   0x5 LB: > { %s372_s17 = sadd.s32 4294967295, %s573_s16   ;;  %s373_s18 = sadd.s32 4294967294, %s573_s16   ;;  %s573_s16 = sphi %s607_s16, %s15_s16   ;;  %s569_s15 = sphi %s605_s15, %s738_s15   ;;  %s565_s14 = sphi %s603_s14, %s737_s14   ;;  %s561_s13 = sphi %s601_s13, %s736_s13   ;;  %s557_s12 = sphi %s599_s12, %s735_s12   ;;  %s553_s11 = sphi %s597_s11, %s734_s11   ;;  %s549_s10 = sphi %s595_s10, %s733_s10   ;;  %s545_s9 = sphi %s593_s9, %s732_s9  }
   0x6   : > { %s24_s19 = sadd.s32 1, %s565_s14  ;;  %s27_s20 = sadd.s32 1, %s569_s15 }
   0x7   : > { %p25_p0 = scmp.ge.s32.totalorder %s24_s19, 2  ;;  %p112_p1 = scmp.ne.s32.totalorder %s553_s11, %s549_s10 }
   0x8   : > { %p113_p2 = scmp.eq.s32.totalorder %s372_s17, 3  ;;  %p118_p4 = scmp.ne.s32.totalorder %s549_s10, %s545_s9 }
   0x9   : > { %s740_s19 = smov (%p25_p0, %s24_s19), 0  ;;  %s742_s20 = smov (!%p25_p0, %s27_s20), %s569_s15 }
   0xa   : > { %p642_p3 = por %p113_p2, %p112_p1  ;;  %p29_p5 = scmp.ge.s32.totalorder %s742_s20, 2 }
   0xb   : > { %p119_p6 = scmp.eq.s32.totalorder %s373_s18, 3  ;;  %p380_p7 = scmp.ge.s32.totalorder %s573_s16, 1 }
   0xc   : > { %p167_p8 = scmp.lt.s32.totalorder %s573_s16, 5  ;;  %s744_s20 = smov (%p29_p5, %s742_s20), 0 }
   0xd   : > { %p652_p9 = por %p119_p6, %p118_p4  ;;  %s99_s23 = ssub.s32 %s569_s15, %s744_s20 }
   0xe   : > { %p168_p10 = pnand %p380_p7, %p167_p8  ;;  %s102_s24 = sadd.s32 1, %s553_s11 }
   0xf   : > { %p100_p11 = scmp.eq.s32.totalorder %s99_s23, 0  ;;  %s197_s26 = sand.u32 (!%p168_p10), 1, %s549_s10  }
  0x10   : > { %171 = sbr.rel (%p168_p10) target bundleno = 480 (0x1e0), region = 28  ;;  %s382_s27 = sshll.u32 (!%p168_p10), %s561_s13, 1 }
  0x11   : > { %s660_s25 = scalar_select %p100_p11, %s553_s11, %s102_s24  }
  0x12   : > { %s381_s28 = sshll.u32 (!%p168_p10), %s197_s26, 3  ;;  %s201_s29 = sadd.s32 (!%p168_p10), %s557_s12, %s382_s27 }
  0x13   : > { %p202_p12 = scmp.lt.s32.totalorder (!%p168_p10), %s201_s29, 3  ;;  %s673_s17 = scalar_lea.vmem (!%p168_p10), [#allocation2], %s381_s28 }
  0x14   : > { %p392_p13 = scmp.ne.s32.totalorder (!%p168_p10), %s557_s12, 0 }
  0x15   : > { %s746_s29 = smov (!%p202_p12, %s201_s29), 3 }
  0x16   : > { %s748_s29 = smov (!%p202_p12, %s746_s29), 3  ;;  %227 = sbr.rel (%p392_p13) target bundleno = 29 (0x1d), region = 32 }
  0x17   : > { %s386_s30 = sshll.u32 %s748_s29, 3 }
  0x18   : > { %s207_s5 = scalar_lea.vmem %s727_s0, %s386_s30  ;;  %s219_s8 = scalar_lea.vmem %s728_s1, %s386_s30 }
  0x1b   : > { %v575_v0 = vmov 0.0  }
  0x1c   : > { %228 = vst [vmem:[%s673_s17] sm:$0xff] %v575_v0 }
  0x1d PF: > { %v229_v1 = vld [vmem:[%s207_s5] sm:$0xff]  ;;  %vm241_vm0 = vcmask 80896   ;;  %v576_v3 = vmov 0   ;;  %v231_v10 = vlaneseq  ;;  %v577_v13 = vmov 0.0   ;;  %s395_s12 = sshll.u32 %s561_s13, 3  ;;  %s287_s27 = sshll.u32 %s673_s17, 4  ;;  %s288_s27 = int_to_ptr.vmem [resolvable:$true] %s287_s27 }
  0x1e   : > { %v242_v2 = vsel %vm241_vm0, %v229_v1, -inf  ;;  %474 = vset.pattern.permute.xlu0 %v576_v3  ;;  %v230_v4 = vld [vmem:[%s219_s8] sm:$0xff]  ;;  %vm260_vm2 = vcmask 7168   ;;  %s285_s24 = scalar_lea.hbm %s729_s2, %s395_s12  ;;  %s275_s30 = scalar_lea.sflag [#allocation3], %s197_s26 }
  0x1f   : > { %243 = vmax.xlane.f32.xlu0 %v242_v2  ;;  %v232_v11 = vand.u32 127, %v231_v10  ;;  %s289_s28 = sshll.u32 %s285_s24, 4  ;;  %s499_s6 = scalar_lea.hbm %s729_s2, 16  ;;  %s290_s28 = int_to_ptr.hbm [resolvable:$true] %s289_s28 }
  0x20   : > { %s493_s3 = sshra.s32 %s290_s28, 4  ;;  %s494_s3 = int_to_ptr.hbm [resolvable:$true] %s493_s3 }
  0x21   : > { %s495_s4 = scalar_lea.hbm %s494_s3, 8  ;;  %p500_p4 = scmp.lt.s32.totalorder %s494_s3, %s729_s2 }
  0x22   : > { %p496_p0 = scmp.ne.s32.totalorder %s494_s3, %s495_s4  ;;  %p501_p5 = scmp.lt.s32.totalorder %s499_s6, %s495_s4 }
  0x23   : > { %v259_v33 = vld [vmem:[%s673_s17] sm:$0xff] }
  0x24   : > { %p497_p1 = pnand %p496_p0, %p642_p3  ;;  %p502_p6 = por %p501_p5, %p500_p4 }
  0x26   : > { %p498_p2 = pneg %p497_p1 }
  0x28   : > { %p503_p7 = pnand %p502_p6, %p498_p2 }
  0x33   : > { %234 = vperm.xlu0 %474, %v230_v4  }
  0x92   : > { %v244_v5 = vpop.xlane.xlu0 %243 }
  0x93   : > { %v245_v6 = vsub.f32 %v229_v1, %v244_v5 }
  0x95   : > { %v246_v7 = vmul.f32 1.442695, %v245_v6 }
  0x97   : > { %475 = vpow2.f32 %v246_v7 }
  0x9d   : > { %v476_v8 = vpop.eup %475 }
  0x9e   : > { %v248_v9 = vsel %vm241_vm0, %v476_v8, 0.0 }
  0x9f   : > { %249 = vadd.xlane.f32.xlu1 %v248_v9 }
  0xa5   : > { %v235_v12 = vpop.permute.xlu0 %234 }
  0xa6   : > { %vm236_vm1 = vcmp.eq.s32.totalorder %v232_v11, %v235_v12 }
  0xa7   : > { %v393_v14 = vsel %vm236_vm1, 1.0, %v577_v13 }
  0xa8   : > { %v239_v15 = vmul.f32 0.8888889, %v393_v14 }
  0xaa   : > { %v240_v16 = vadd.f32 0.011111111, %v239_v15 }
  0xac   : > { %v253_v17 = vmul.f32 %v245_v6, %v240_v16 }
  0xae   : > { %v254_v18 = vsel %vm241_vm0, %v253_v17, 0.0 }
  0xaf   : > { %255 = vadd.xlane.f32.xlu1 %v254_v18 }
 0x112   : > { %v250_v19 = vpop.xlane.xlu1 %249 }
 0x113   : > { %477 = vlog2.f32 %v250_v19 }
 0x119   : > { %v478_v20 = vpop.eup %477 }
 0x11a   : > { %v252_v21 = vmul.f32 0.6931472, %v478_v20 }
 0x122   : > { %v256_v22 = vpop.xlane.xlu1 %255 }
 0x123   : > { %v257_v23 = vsub.f32 %v256_v22, %v252_v21 }
 0x125   : > { %v258_v24 = vsub.f32 0.0, %v257_v23 }
 0x127   : > { %v261_v25 = vsel %vm260_vm2, %v258_v24, 0.0 }
 0x128   : > { %262 = vadd.xlane.f32.xlu2 %v261_v25 }
 0x19b   : > { %v263_v26 = vpop.xlane.xlu2 %262 }
 0x19c   : > { %v264_v27 = vrot.slane %v263_v26, 4 }
 0x19e   : > { %v265_v28 = vadd.f32 %v264_v27, %v263_v26 }
 0x1a0   : > { %v266_v29 = vrot.slane %v265_v28, 2 }
 0x1a2   : > { %v267_v30 = vadd.f32 %v266_v29, %v265_v28 }
 0x1a4   : > { %v268_v31 = vrot.slane %v267_v30, 1 }
 0x1a6   : > { %v269_v32 = vadd.f32 %v268_v31, %v267_v30 }
 0x1a8   : > { %398 = vpush %v269_v32 }
 0x1d9   : > { %s399_s29 = spop %398 }
 0x1da   : > { %v271_v34 = vstv %s399_s29 }
 0x1db   : > { %v272_v35 = vadd.f32 %v271_v34, %v259_v33 }
 0x1dd   : > { %273 = vst [vmem:[%s673_s17] sm:$0xff] %v272_v35 }
 0x1de   : > { %506 = shalt.err (!%p503_p7)
}
 0x1df   : > { %400 = dma.vmem_to_hbm [thread:$0]  (%p642_p3), %s288_s27, 128, %s290_s28, %s275_s30  }
 0x1e0 PF: > { %p406_p8 = scmp.ge.s32.totalorder %s573_s16, 2  ;;  %s301_s26 = sand.u32 1, %s545_s9  }
 0x1e1   : > { %s302_s17 = scalar_lea.sflag [#allocation3], %s301_s26 }
 0x1e2   : > { %p403_p10 = pnand %p406_p8, %p652_p9 }
 0x1e4   : > { %p404_p11 = pneg %p403_p10 }
 0x1e6   : > { %540 = dma.done.wait (%p404_p11), %s302_s17, 128  }
 0x1e7   : > { %542 = vsyncadd (%p404_p11), %s302_s17, 4294967168  ;;  %s15_s16 = sadd.s32 1, %s573_s16   ;;  %s732_s9 = smov %s549_s10 }
 0x1e8   : > { %p12_p12 = scmp.ge.s32.totalorder %s15_s16, 6   ;;  %s733_s10 = smov %s553_s11 }
 0x1e9   : > { %s734_s11 = smov %s660_s25  ;;  %s735_s12 = smov %s565_s14 }
 0x1ea   : > { %s736_s13 = smov %s569_s15  ;;  %s737_s14 = smov %s740_s19 }
 0x1eb   : > { %s738_s15 = smov %s744_s20  ;;  %14 = sbr.rel (!%p12_p12) target bundleno = 5 (0x5), region = 70 }
 0x1f0   :  { %308 = vsyncpa [#allocation3], 1 }
 0x1f1   :  { %310 = vsyncpa [#allocation3 + $0x1], 1 }

</bundles_post_ra>
